<compile_context>
chip_gen: v7x
topology: tpu7x:2x2x1
jax: 0.10.0
libtpu: 0.0.40
codegen_flags: <defaults>
</compile_context>

<pallas_src>
import functools

import jax
import jax.numpy as jnp
from jax.experimental import pallas as pl
from jax.experimental.pallas import tpu as pltpu

D_MODEL = 512
EPS = 1e-12  # matches the PyTorch module's default (NOT nn.LayerNorm's 1e-5)


def layernorm_kernel(x_ref, gamma_ref, beta_ref, o_ref, *, eps):
    # x_ref: (TILE_ROWS, D) block; gamma/beta: (1, D) resident in VMEM.
    x = x_ref[...].astype(jnp.float32)
    d = x.shape[-1]
    inv_d = jnp.float32(1.0 / d)

    # Centered (two-pass-in-registers) statistics: matches PyTorch's
    # var(unbiased=False) without E[x^2]-mean^2 cancellation.
    mean = jnp.sum(x, axis=-1, keepdims=True) * inv_d
    xc = x - mean
    var = jnp.sum(xc * xc, axis=-1, keepdims=True) * inv_d
    inv = jax.lax.rsqrt(var + jnp.float32(eps))  # EUP slot, effectively free

    out = xc * inv
    out = gamma_ref[...].astype(jnp.float32) * out + beta_ref[...].astype(jnp.float32)
    o_ref[...] = out.astype(o_ref.dtype)


def _vmem_capacity_bytes():
    try:
        return int(pltpu.get_tpu_info().vmem_capacity_bytes)
    except Exception:
        return 64 << 20  # conservative fallback: v7x physical VMEM


def layer_norm(x, gamma, beta, *, eps=EPS, max_tile_rows=2048):
    """x: (..., d_model). Normalizes over the last axis."""
    orig_shape = x.shape
    d = orig_shape[-1]
    x2 = x.reshape(-1, d)
    rows = x2.shape[0]

    # Adaptive row tile (multiple of 8 for f32 sublanes):
    #   num_tiles = ceil(rows / max_tile_rows); tile = round_up(ceil(rows/num_tiles), 8)
    # keeps the ragged remainder below 8 rows instead of up to a full tile.
    num_tiles = max(1, pl.cdiv(rows, max_tile_rows))
    tile_rows = ((pl.cdiv(rows, num_tiles) + 7) // 8) * 8

    gamma2 = gamma.reshape(1, d)
    beta2 = beta.reshape(1, d)

    # VMEM budget: double-buffered input + output blocks, gamma/beta, slack.
    # Upper clamp is generation-aware (75% of physical VMEM on this chip).
    tile_bytes = tile_rows * d * x2.dtype.itemsize
    vmem_bytes = 2 * 2 * tile_bytes + 2 * 2 * d * 4 + (4 << 20)
    vmem_cap = int(0.75 * _vmem_capacity_bytes())
    vmem_bytes = int(min(max(vmem_bytes, 16 << 20), vmem_cap))

    # Ragged grid: Pallas masks out-of-bounds writes on the last partial block
    # and the per-row stats mean pad rows never touch valid output rows.
    grid = (pl.cdiv(rows, tile_rows),)
    out = pl.pallas_call(
        functools.partial(layernorm_kernel, eps=eps),
        out_shape=jax.ShapeDtypeStruct((rows, d), x.dtype),
        grid_spec=pltpu.PrefetchScalarGridSpec(
            num_scalar_prefetch=0,
            grid=grid,
            in_specs=[
                pl.BlockSpec((tile_rows, d), lambda i: (i, 0)),
                pl.BlockSpec((1, d), lambda i: (0, 0)),  # VMEM-resident, fetched once
                pl.BlockSpec((1, d), lambda i: (0, 0)),
            ],
            out_specs=pl.BlockSpec((tile_rows, d), lambda i: (i, 0)),
        ),
        compiler_params=pltpu.CompilerParams(
            dimension_semantics=("parallel",),  # shards rows across v7x's 2 TCs
            vmem_limit_bytes=vmem_bytes,
        ),
    )(x2, gamma2, beta2)

    return out.reshape(orig_shape)


def _reference(x, gamma, beta, eps=EPS):
    mean = jnp.mean(x, axis=-1, keepdims=True)
    var = jnp.mean((x - mean) ** 2, axis=-1, keepdims=True)
    return gamma * (x - mean) / jnp.sqrt(var + eps) + beta


if __name__ == "__main__":
    key = jax.random.PRNGKey(0)
    d_model = D_MODEL

    # Parameters matching nn.Parameter(ones/zeros(d_model)).
    gamma = jnp.ones((d_model,), jnp.float32)
    beta = jnp.zeros((d_model,), jnp.float32)

    # 1) Tile-aligned shape (batch=2, seq=8 -> 16 rows).
    k1, k2 = jax.random.split(key)
    x_a = jax.random.normal(k1, (2, 8, d_model), dtype=jnp.float32)
    # Add a non-zero per-row offset so the centered-variance path is exercised.
    x_a = x_a + 3.0
    out_a = jax.block_until_ready(layer_norm(x_a, gamma, beta))
    assert jnp.allclose(out_a, _reference(x_a, gamma, beta), atol=1e-5, rtol=1e-5), \
        "mismatch vs reference (aligned case)"

    # 2) Ragged shape (batch=2, seq=9 -> 18 rows, not a multiple of 8) with a
    #    small forced tile so the masked partial-last-block path is exercised.
    x_b = jax.random.normal(k2, (2, 9, d_model), dtype=jnp.float32) * 0.5 + 1.0
    out_b = jax.block_until_ready(layer_norm(x_b, gamma, beta, max_tile_rows=8))
    assert jnp.allclose(out_b, _reference(x_b, gamma, beta), atol=1e-5, rtol=1e-5), \
        "mismatch vs reference (ragged case)"

    print("KERNEL_OK")
</pallas_src>

<mosaic_0001>
module attributes {stable_mosaic.version = 11 : i64} {
  func.func @layernorm_kernel(%arg0: i32, %arg1: memref<16x512xf32, #tpu.memory_space<vmem>>, %arg2: memref<1x512xf32, #tpu.memory_space<vmem>>, %arg3: memref<1x512xf32, #tpu.memory_space<vmem>>, %arg4: memref<16x512xf32, #tpu.memory_space<vmem>>) attributes {dimension_semantics = [#tpu.dimension_semantics<parallel>], iteration_bounds = array<i64: 1>, scalar_prefetch = 0 : i64, scratch_operands = 0 : i64, tpu.core_type = #tpu.core_type<tc>, window_params = [{transform_indices = @transform_0, window_bounds = array<i64: 16, 512>}, {pipeline_mode = #tpu.pipeline_mode<synchronous>, transform_indices = @transform_1, window_bounds = array<i64: 1, 512>}, {pipeline_mode = #tpu.pipeline_mode<synchronous>, transform_indices = @transform_2, window_bounds = array<i64: 1, 512>}, {transform_indices = @transform_3, window_bounds = array<i64: 16, 512>}]} {
    %c0 = arith.constant 0 : index
    %c0_0 = arith.constant 0 : index
    %0 = vector.load %arg1[%c0, %c0_0] : memref<16x512xf32, #tpu.memory_space<vmem>>, vector<16x512xf32>
    %cst = arith.constant dense<0.000000e+00> : vector<16xf32>
    %1 = vector.multi_reduction <add>, %0, %cst [1] : vector<16x512xf32> to vector<16xf32>
    %2 = vector.shape_cast %1 : vector<16xf32> to vector<16x1xf32>
    %cst_1 = arith.constant 0.001953125 : f32
    %3 = vector.broadcast %cst_1 : f32 to vector<16x1xf32>
    %4 = arith.mulf %2, %3 : vector<16x1xf32>
    %5 = vector.broadcast %4 : vector<16x1xf32> to vector<16x512xf32>
    %6 = arith.subf %0, %5 : vector<16x512xf32>
    %7 = arith.mulf %6, %6 : vector<16x512xf32>
    %cst_2 = arith.constant dense<0.000000e+00> : vector<16xf32>
    %8 = vector.multi_reduction <add>, %7, %cst_2 [1] : vector<16x512xf32> to vector<16xf32>
    %9 = vector.shape_cast %8 : vector<16xf32> to vector<16x1xf32>
    %cst_3 = arith.constant 0.001953125 : f32
    %10 = vector.broadcast %cst_3 : f32 to vector<16x1xf32>
    %11 = arith.mulf %9, %10 : vector<16x1xf32>
    %cst_4 = arith.constant 9.99999996E-13 : f32
    %12 = vector.broadcast %cst_4 : f32 to vector<16x1xf32>
    %13 = arith.addf %11, %12 : vector<16x1xf32>
    %14 = math.rsqrt %13 : vector<16x1xf32>
    %15 = vector.broadcast %14 : vector<16x1xf32> to vector<16x512xf32>
    %16 = arith.mulf %6, %15 : vector<16x512xf32>
    %c0_5 = arith.constant 0 : index
    %c0_6 = arith.constant 0 : index
    %17 = vector.load %arg2[%c0_5, %c0_6] : memref<1x512xf32, #tpu.memory_space<vmem>>, vector<1x512xf32>
    %18 = vector.broadcast %17 : vector<1x512xf32> to vector<16x512xf32>
    %19 = arith.mulf %18, %16 : vector<16x512xf32>
    %c0_7 = arith.constant 0 : index
    %c0_8 = arith.constant 0 : index
    %20 = vector.load %arg3[%c0_7, %c0_8] : memref<1x512xf32, #tpu.memory_space<vmem>>, vector<1x512xf32>
    %21 = vector.broadcast %20 : vector<1x512xf32> to vector<16x512xf32>
    %22 = arith.addf %19, %21 : vector<16x512xf32>
    %c0_9 = arith.constant 0 : index
    %c0_10 = arith.constant 0 : index
    %23 = vector.load %arg4[%c0_9, %c0_10] : memref<16x512xf32, #tpu.memory_space<vmem>>, vector<16x512xf32>
    tpu.vector_store %arg4[%c0_9, %c0_10], %22 {strides = array<i32>} : memref<16x512xf32, #tpu.memory_space<vmem>>, vector<16x512xf32>,
    return
  }
  func.func @transform_0(%arg0: i32) -> (i32, i32) {
    %c0_i32 = arith.constant 0 : i32
    %c0_i32_0 = arith.constant 0 : i32
    return %arg0, %c0_i32 : i32, i32
  }
  func.func @transform_1(%arg0: i32) -> (i32, i32) {
    %c0_i32 = arith.constant 0 : i32
    %c0_i32_0 = arith.constant 0 : i32
    %c0_i32_1 = arith.constant 0 : i32
    return %c0_i32, %c0_i32_0 : i32, i32
  }
  func.func @transform_2(%arg0: i32) -> (i32, i32) {
    %c0_i32 = arith.constant 0 : i32
    %c0_i32_0 = arith.constant 0 : i32
    %c0_i32_1 = arith.constant 0 : i32
    return %c0_i32, %c0_i32_0 : i32, i32
  }
  func.func @transform_3(%arg0: i32) -> (i32, i32) {
    %c0_i32 = arith.constant 0 : i32
    %c0_i32_0 = arith.constant 0 : i32
    return %arg0, %c0_i32 : i32, i32
  }
}

</mosaic_0001>

<bundles_post_ra>
// kernel: tpu_custom_call.1
= control target key start
LH: loop header
LB: loop body
LE: loop exit
PB: predicated region body
PF: predicated region fallthrough
CT: control target
= control target key end

     0   :  { %8 = vsyncpa [#allocation3], 0  ;;  %s338_s0 = inlined_call_operand.hbm [shape: f32[16,512], index: 0, kind: input, shape index: {}]   ;;  %s339_s1 = inlined_call_operand.hbm [shape: f32[1,512], index: 1, kind: input, shape index: {}]   ;;  %s340_s2 = inlined_call_operand.vmem [shape: f32[1,512], index: 2, kind: input, shape index: {}]   ;;  %s341_s3 = inlined_call_operand.hbm [shape: f32[16,512], index: 3, kind: output, shape index: {}]  }
   0x1   :  { %9 = vsyncpa [#allocation6], 0 }
   0x2   :  { %10 = vsyncpa [#allocation4], 0  ;;  %s268_s12 = smov [#allocation2]   ;;  %s196_s16 = scalar_lea.hbm %s338_s0, 1024 }
   0x3   :  { %s16_s13 = sshll.u32 %s268_s12, 4  ;;  %p197_p0 = scmp.ne.s32.totalorder %s338_s0, %s196_s16  ;;  %s17_s13 = int_to_ptr.vmem [resolvable:$true] %s16_s13 }
   0x4   :  { %p200_p1 = scmp.lt.u32.totalorder %s196_s16, %s338_s0 }
   0x6   :  { %p202_p2 = pnand %p200_p1, %p197_p0 }
   0x8   :  { %205 = shalt.err (!%p202_p2)
}
   0x9   :  { %s206_s21 = scalar_lea.vmem %s17_s13, 1024  ;;  %p211_p4 = scmp.lt.s32.totalorder %s17_s13, %s17_s13 }
   0xa   :  { %p207_p3 = scmp.ne.s32.totalorder %s17_s13, %s206_s21  ;;  %p212_p5 = scmp.lt.s32.totalorder %s206_s21, %s206_s21 }
   0xc   :  { %p213_p6 = por %p212_p5, %p211_p4 }
   0xe   :  { %p214_p7 = pnand %p213_p6, %p207_p3 }
  0x10   :  { %217 = shalt.err (!%p214_p7)
}
  0x11   :  { %s269_s22 = smov 512   ;;  %s270_s23 = smov 32  }
  0x12   :  { %22 = dma.hbm_to_vmem [thread:$0]  %s338_s0, 1024, %s17_s13, [#allocation3], %s269_s22, %s269_s22, %s270_s23  }
  0x13   :  { %s271_s26 = smov [#allocation5]   ;;  %s218_s30 = scalar_lea.hbm %s339_s1, 64 }
  0x14   :  { %s29_s27 = sshll.u32 %s271_s26, 4  ;;  %p219_p8 = scmp.ne.s32.totalorder %s339_s1, %s218_s30  ;;  %s30_s27 = int_to_ptr.vmem [resolvable:$true] %s29_s27 }
  0x15   :  { %p222_p9 = scmp.lt.u32.totalorder %s218_s30, %s339_s1 }
  0x17   :  { %p224_p10 = pnand %p222_p9, %p219_p8 }
  0x19   :  { %227 = shalt.err (!%p224_p10)
}
  0x1a   :  { %s228_s8 = scalar_lea.vmem %s30_s27, 64  ;;  %p233_p12 = scmp.lt.s32.totalorder %s30_s27, %s30_s27 }
  0x1b   :  { %p229_p11 = scmp.ne.s32.totalorder %s30_s27, %s228_s8  ;;  %p234_p13 = scmp.lt.s32.totalorder %s228_s8, %s228_s8 }
  0x1d   :  { %p235_p0 = por %p234_p13, %p233_p12 }
  0x1f   :  { %p236_p1 = pnand %p235_p0, %p229_p11 }
  0x21   :  { %239 = shalt.err (!%p236_p1)
}
  0x22   :  { %32 = dma.hbm_to_vmem [thread:$0]  %s339_s1, 64, %s30_s27, [#allocation6]  }
  0x23   :  { %262 = dma.done.wait [#allocation3], 1024  }
  0x24   :  { %263 = vsyncadd [#allocation3], 4294966272 }
  0x25   :  { %264 = dma.done.wait [#allocation6], 64  }
  0x26   :  { %265 = vsyncadd [#allocation6], 4294967232  ;;  %v41_v0 = vld [vmem:[#allocation2] sm:$0xff]  ;;  %v42_v1 = vld [vmem:[#allocation2 + $0x8] sm:$0xff]  ;;  %v103_v42 = vlaneseq }
  0x27   :  { %v43_v2 = vld [vmem:[#allocation2 + $0x10] sm:$0xff]  ;;  %v49_v3 = vadd.f32 %v42_v1, %v41_v0  ;;  %v45_v4 = vld [vmem:[#allocation2 + $0x20] sm:$0xff]  ;;  %v46_v5 = vld [vmem:[#allocation2 + $0x28] sm:$0xff] }
  0x28   :  { %v44_v6 = vld [vmem:[#allocation2 + $0x18] sm:$0xff]  ;;  %v47_v7 = vld [vmem:[#allocation2 + $0x30] sm:$0xff]  ;;  %v54_v8 = vadd.f32 %v46_v5, %v45_v4  ;;  %v104_v46 = vshrl.u32 %v103_v42, 7  ;;  %v101_v52 = vld [vmem:[#allocation5] sm:$0xf] }
  0x29   :  { %v50_v9 = vadd.f32 %v49_v3, %v43_v2  ;;  %v48_v10 = vld [vmem:[#allocation2 + $0x38] sm:$0xff]  ;;  %v131_v57 = vld [vmem:[%s340_s2] sm:$0xf]  ;;  %s272_s2 = smov [#allocation7]  }
  0x2a   :  { %v55_v11 = vadd.f32 %v54_v8, %v47_v7  ;;  %v105_v48 = vsub.s32 0, %v104_v46  ;;  %v109_v49 = vsub.s32 1, %v104_v46  ;;  %v113_v50 = vsub.s32 2, %v104_v46  ;;  %s174_s11 = sshll.u32 %s272_s2, 4  ;;  %s175_s11 = int_to_ptr.vmem [resolvable:$true] %s174_s11 }
  0x2b   :  { %v51_v12 = vadd.f32 %v50_v9, %v44_v6  ;;  %v117_v51 = vsub.s32 3, %v104_v46  ;;  %s240_s12 = scalar_lea.vmem %s175_s11, 1024  ;;  %p245_p3 = scmp.lt.s32.totalorder %s175_s11, %s175_s11 }
  0x2c   :  { %v56_v13 = vadd.f32 %v55_v11, %v48_v10  ;;  %v106_v53 = vrot.slane %v101_v52, %v105_v48  ;;  %v110_v54 = vrot.slane %v101_v52, %v109_v49  ;;  %v114_v55 = vrot.slane %v101_v52, %v113_v50  ;;  %p241_p2 = scmp.ne.s32.totalorder %s175_s11, %s240_s12  ;;  %p246_p4 = scmp.lt.s32.totalorder %s240_s12, %s240_s12 }
  0x2d   :  { %52 = vadd.xlane.f32.xlu0 %v51_v12  ;;  %v118_v56 = vrot.slane %v101_v52, %v117_v51  ;;  %v136_v63 = vrot.slane %v131_v57, %v105_v48 }
  0x2e   :  { %p247_p5 = por %p246_p4, %p245_p3 }
  0x30   :  { %p248_p6 = pnand %p247_p5, %p241_p2 }
  0x31   :  { %57 = vadd.xlane.f32.xlu0 %v56_v13 }
  0xba   :  { %v53_v14 = vpop.xlane.xlu0 %52 }
  0xbb   :  { %v59_v15 = vmul.f32 0.001953125, %v53_v14 }
  0xbd   :  { %v61_v16 = vsub.f32 %v41_v0, %v59_v15  ;;  %v62_v17 = vsub.f32 %v42_v1, %v59_v15  ;;  %v63_v18 = vsub.f32 %v43_v2, %v59_v15  ;;  %v64_v20 = vsub.f32 %v44_v6, %v59_v15 }
  0xbe   :  { %v58_v19 = vpop.xlane.xlu0 %57  ;;  %v140_v0 = vrot.slane %v131_v57, %v109_v49  ;;  %v144_v1 = vrot.slane %v131_v57, %v113_v50  ;;  %v148_v2 = vrot.slane %v131_v57, %v117_v51 }
  0xbf   :  { %v60_v21 = vmul.f32 0.001953125, %v58_v19  ;;  %v69_v22 = vmul.f32 %v61_v16, %v61_v16  ;;  %v70_v23 = vmul.f32 %v62_v17, %v62_v17  ;;  %v71_v24 = vmul.f32 %v63_v18, %v63_v18 }
  0xc0   :  { %v72_v29 = vmul.f32 %v64_v20, %v64_v20 }
  0xc1   :  { %v65_v25 = vsub.f32 %v45_v4, %v60_v21  ;;  %v66_v26 = vsub.f32 %v46_v5, %v60_v21  ;;  %v77_v27 = vadd.f32 %v70_v23, %v69_v22  ;;  %v67_v28 = vsub.f32 %v47_v7, %v60_v21 }
  0xc2   :  { %v68_v31 = vsub.f32 %v48_v10, %v60_v21 }
  0xc3   :  { %v78_v30 = vadd.f32 %v77_v27, %v71_v24  ;;  %v73_v32 = vmul.f32 %v65_v25, %v65_v25  ;;  %v74_v33 = vmul.f32 %v66_v26, %v66_v26  ;;  %v75_v35 = vmul.f32 %v67_v28, %v67_v28 }
  0xc4   :  { %v76_v37 = vmul.f32 %v68_v31, %v68_v31 }
  0xc5   :  { %v79_v34 = vadd.f32 %v78_v30, %v72_v29  ;;  %v82_v36 = vadd.f32 %v74_v33, %v73_v32 }
  0xc7   :  { %80 = vadd.xlane.f32.xlu1 %v79_v34  ;;  %v83_v38 = vadd.f32 %v82_v36, %v75_v35 }
  0xc9   :  { %v84_v39 = vadd.f32 %v83_v38, %v76_v37 }
  0xcb   :  { %85 = vadd.xlane.f32.xlu1 %v84_v39 }
 0x154   :  { %v81_v40 = vpop.xlane.xlu1 %80 }
 0x155   :  { %v87_v41 = vmul.f32 0.001953125, %v81_v40 }
 0x157   :  { %v89_v43 = vadd.f32 1e-12, %v87_v41 }
 0x158   :  { %v86_v44 = vpop.xlane.xlu1 %85 }
 0x159   :  { %192 = vrsqrt.f32 %v89_v43  ;;  %v88_v45 = vmul.f32 0.001953125, %v86_v44 }
 0x15b   :  { %v90_v47 = vadd.f32 1e-12, %v88_v45 }
 0x15d   :  { %194 = vrsqrt.f32 %v90_v47 }
 0x163   :  { %v193_v58 = vpop.eup %192 }
 0x164   :  { %v93_v59 = vmul.f32 %v193_v58, %v61_v16  ;;  %v94_v60 = vmul.f32 %v193_v58, %v62_v17  ;;  %v95_v61 = vmul.f32 %v193_v58, %v63_v18  ;;  %v96_v62 = vmul.f32 %v193_v58, %v64_v20 }
 0x166   :  { %v123_v3 = vmul.f32 %v106_v53, %v93_v59  ;;  %v124_v4 = vmul.f32 %v110_v54, %v94_v60  ;;  %v125_v5 = vmul.f32 %v114_v55, %v95_v61  ;;  %v126_v6 = vmul.f32 %v118_v56, %v96_v62 }
 0x167   :  { %v195_v7 = vpop.eup %194 }
 0x168   :  { %v97_v8 = vmul.f32 %v195_v7, %v65_v25  ;;  %v98_v9 = vmul.f32 %v195_v7, %v66_v26  ;;  %v99_v10 = vmul.f32 %v195_v7, %v67_v28  ;;  %v100_v11 = vmul.f32 %v195_v7, %v68_v31 }
 0x169   :  { %v153_v12 = vadd.f32 %v136_v63, %v123_v3  ;;  %v154_v13 = vadd.f32 %v140_v0, %v124_v4  ;;  %v155_v14 = vadd.f32 %v144_v1, %v125_v5  ;;  %v156_v15 = vadd.f32 %v148_v2, %v126_v6 }
 0x16a   :  { %v127_v16 = vmul.f32 %v106_v53, %v97_v8  ;;  %v128_v17 = vmul.f32 %v110_v54, %v98_v9  ;;  %v129_v18 = vmul.f32 %v114_v55, %v99_v10  ;;  %v130_v19 = vmul.f32 %v118_v56, %v100_v11 }
 0x16b   :  { %161 = vst [vmem:[#allocation7] sm:$0xff] %v153_v12  ;;  %162 = vst [vmem:[#allocation7 + $0x8] sm:$0xff] %v154_v13 }
 0x16c   :  { %163 = vst [vmem:[#allocation7 + $0x10] sm:$0xff] %v155_v14  ;;  %164 = vst [vmem:[#allocation7 + $0x18] sm:$0xff] %v156_v15  ;;  %v157_v20 = vadd.f32 %v136_v63, %v127_v16  ;;  %v158_v21 = vadd.f32 %v140_v0, %v128_v17  ;;  %v159_v22 = vadd.f32 %v144_v1, %v129_v18 }
 0x16d   :  { %v160_v23 = vadd.f32 %v148_v2, %v130_v19 }
 0x16e   :  { %165 = vst [vmem:[#allocation7 + $0x20] sm:$0xff] %v157_v20  ;;  %166 = vst [vmem:[#allocation7 + $0x28] sm:$0xff] %v158_v21 }
 0x16f   :  { %167 = vst [vmem:[#allocation7 + $0x30] sm:$0xff] %v159_v22  ;;  %168 = vst [vmem:[#allocation7 + $0x38] sm:$0xff] %v160_v23 }
 0x170   :  { %251 = shalt.err (!%p248_p6)
}
 0x171   :  { %s252_s15 = scalar_lea.hbm %s341_s3, 1024 }
 0x172   :  { %p253_p7 = scmp.ne.s32.totalorder %s341_s3, %s252_s15  ;;  %p256_p8 = scmp.lt.u32.totalorder %s252_s15, %s341_s3 }
 0x174   :  { %p258_p9 = pnand %p256_p8, %p253_p7 }
 0x176   :  { %261 = shalt.err (!%p258_p9)
}
 0x177   :  { %180 = dma.vmem_to_hbm [thread:$0]  %s175_s11, 1024, %s341_s3, [#allocation4], %s269_s22, %s269_s22, %s270_s23  }
 0x178   :  { %266 = dma.done.wait [#allocation4], 1024  }
 0x179   :  { %267 = vsyncadd [#allocation4], 4294966272 }
 0x17a   :  { %184 = vsyncpa [#allocation3], 1 }
 0x17b   :  { %185 = vsyncpa [#allocation6], 1 }
 0x17c   :  { %186 = vsyncpa [#allocation4], 1 }

</bundles_post_ra>
